<compile_context>
chip_gen: v6e
topology: v6e:2x2x1
jax: 0.10.0
libtpu: 0.0.40
codegen_flags: <defaults>
</compile_context>

<pallas_src>
import functools

import jax
import jax.numpy as jnp
from jax.experimental import pallas as pl
from jax.experimental.pallas import tpu as pltpu

_SUBLANE = 8
# Budget for the tiles themselves; chosen so it fits every generation
# (v7x: 64 MiB physical VMEM, v5e/v6e: 128 MiB). Raise on v5e/v6e if desired.
_TILE_VMEM_BUDGET = 32 * 1024 * 1024
# Scoped VMEM limit handed to Mosaic (> default 32 MiB, < v7x physical 64 MiB).
_VMEM_LIMIT_BYTES = 48 * 1024 * 1024


def _round_up(x, m):
    return (x + m - 1) // m * m


def _choose_tile_rows(rows, features, dtype_bytes, budget_bytes=_TILE_VMEM_BUDGET):
    """Largest row tile (multiple of 8, <= 1024) whose VMEM footprint fits the budget.

    Per tile row we account for:
      input tile (double-buffered)  : 2 * features * dtype_bytes
      output tile (double-buffered) : 2 * features * dtype_bytes
      in-kernel f32 working set     : ~3 * features * 4
    """
    per_row = features * (4 * dtype_bytes + 3 * 4)
    t = max(_SUBLANE, (budget_bytes // per_row) // _SUBLANE * _SUBLANE)
    t = min(t, 1024)                          # step overhead already amortized by here
    t = min(t, _round_up(rows, _SUBLANE))     # never tile past the whole problem
    return max(t, _SUBLANE)


def _layernorm_kernel(x_ref, a_ref, b_ref, o_ref, *, eps, features, approx):
    # x_ref: (tile_rows, features); a_ref/b_ref: (1, features), already f32.
    x = x_ref[...].astype(jnp.float32)
    inv_n = 1.0 / features
    inv_nm1 = 1.0 / (features - 1)
    mean = jnp.sum(x, axis=-1, keepdims=True) * inv_n
    diff = x - mean
    # torch.std default is unbiased (Bessel's correction: divide by N-1).
    var = jnp.sum(diff * diff, axis=-1, keepdims=True) * inv_nm1
    std = jnp.sqrt(var)
    # NOTE: reference divides by (std + eps), not sqrt(var + eps).
    # Per-row reciprocal on the EUP instead of a per-element VPU divide.
    inv = pl.reciprocal(std + eps, approx=approx)          # (tile_rows, 1)
    y = (diff * inv) * a_ref[...] + b_ref[...]
    o_ref[...] = y.astype(o_ref.dtype)


def layer_norm(x, a_2, b_2, eps=1e-6, *, tile_rows=None, approx_reciprocal=True):
    """x: (..., features); a_2, b_2: (features,). Normalizes along the last axis."""
    features = x.shape[-1]
    orig_shape = x.shape
    x2d = x.reshape(-1, features)
    rows = x2d.shape[0]

    dtype_bytes = jnp.dtype(x.dtype).itemsize
    if tile_rows is None:
        tile_rows = _choose_tile_rows(rows, features, dtype_bytes)
    tile_rows = max(_SUBLANE, _round_up(int(tile_rows), _SUBLANE))

    # Handle row counts that are not a multiple of the tile: pad, then slice.
    padded_rows = pl.cdiv(rows, tile_rows) * tile_rows
    if padded_rows != rows:
        x2d = jnp.pad(x2d, ((0, padded_rows - rows), (0, 0)))

    # Hoist parameter cast/reshape out of the kernel (done once per call).
    a2d = a_2.astype(jnp.float32).reshape(1, features)
    b2d = b_2.astype(jnp.float32).reshape(1, features)

    kernel = functools.partial(
        _layernorm_kernel, eps=eps, features=features, approx=approx_reciprocal
    )

    out = pl.pallas_call(
        kernel,
        out_shape=jax.ShapeDtypeStruct((padded_rows, features), x.dtype),
        grid_spec=pltpu.PrefetchScalarGridSpec(
            num_scalar_prefetch=0,
            grid=(padded_rows // tile_rows,),
            in_specs=[
                pl.BlockSpec((tile_rows, features), lambda i: (i, 0)),
                pl.BlockSpec((1, features), lambda i: (0, 0)),
                pl.BlockSpec((1, features), lambda i: (0, 0)),
            ],
            out_specs=pl.BlockSpec((tile_rows, features), lambda i: (i, 0)),
        ),
        compiler_params=pltpu.CompilerParams(
            dimension_semantics=("parallel",),
            vmem_limit_bytes=_VMEM_LIMIT_BYTES,
        ),
    )(x2d, a2d, b2d)

    if padded_rows != rows:
        out = out[:rows]
    return out.reshape(orig_shape)


def _torch_style_ref(x, a, b, eps):
    mean = jnp.mean(x, axis=-1, keepdims=True)
    std = jnp.std(x, axis=-1, keepdims=True, ddof=1)
    return a * (x - mean) / (std + eps) + b


if __name__ == "__main__":
    key = jax.random.PRNGKey(0)
    k1, k2 = jax.random.split(key)

    # Small but lane-dense shape (d_model = 128 fills the 128-lane vregs).
    batch, seq, d_model = 2, 8, 128
    x = jax.random.normal(k1, (batch, seq, d_model), dtype=jnp.float32)
    # nn.Parameter(torch.ones(features)) / nn.Parameter(torch.zeros(features))
    a_2 = jnp.ones((d_model,), dtype=jnp.float32)
    b_2 = jnp.zeros((d_model,), dtype=jnp.float32)
    ref = _torch_style_ref(x, a_2, b_2, 1e-6)

    # Exact-reciprocal path: must match the torch-style reference tightly.
    y_exact = jax.block_until_ready(
        layer_norm(x, a_2, b_2, eps=1e-6, approx_reciprocal=False)
    )
    assert jnp.allclose(y_exact, ref, atol=1e-5, rtol=1e-5), "exact path mismatch"

    # Default fast path (EUP approximate reciprocal): looser tolerance.
    y_fast = jax.block_until_ready(layer_norm(x, a_2, b_2, eps=1e-6))
    assert jnp.allclose(y_fast, ref, atol=2e-2, rtol=2e-2), "approx path mismatch"

    # Row count (3*7 = 21) not a multiple of the tile: exercises pad + slice path.
    x_tail = jax.random.normal(k2, (3, 7, d_model), dtype=jnp.float32)
    ref_tail = _torch_style_ref(x_tail, a_2, b_2, 1e-6)
    y_tail = jax.block_until_ready(
        layer_norm(x_tail, a_2, b_2, eps=1e-6, approx_reciprocal=False)
    )
    assert jnp.allclose(y_tail, ref_tail, atol=1e-5, rtol=1e-5), "ragged-rows mismatch"

    print("KERNEL_OK")
</pallas_src>

<mosaic_0001>
module attributes {stable_mosaic.version = 11 : i64} {
  func.func @_layernorm_kernel(%arg0: i32, %arg1: memref<16x128xf32, #tpu.memory_space<vmem>>, %arg2: memref<1x128xf32, #tpu.memory_space<vmem>>, %arg3: memref<1x128xf32, #tpu.memory_space<vmem>>, %arg4: memref<16x128xf32, #tpu.memory_space<vmem>>) attributes {dimension_semantics = [#tpu.dimension_semantics<parallel>], iteration_bounds = array<i64: 1>, scalar_prefetch = 0 : i64, scratch_operands = 0 : i64, tpu.core_type = #tpu.core_type<tc>, window_params = [{transform_indices = @transform_0, window_bounds = array<i64: 16, 128>}, {pipeline_mode = #tpu.pipeline_mode<synchronous>, transform_indices = @transform_1, window_bounds = array<i64: 1, 128>}, {pipeline_mode = #tpu.pipeline_mode<synchronous>, transform_indices = @transform_2, window_bounds = array<i64: 1, 128>}, {transform_indices = @transform_3, window_bounds = array<i64: 16, 128>}]} {
    %c0 = arith.constant 0 : index
    %c0_0 = arith.constant 0 : index
    %0 = vector.load %arg1[%c0, %c0_0] : memref<16x128xf32, #tpu.memory_space<vmem>>, vector<16x128xf32>
    %cst = arith.constant dense<0.000000e+00> : vector<16xf32>
    %1 = vector.multi_reduction <add>, %0, %cst [1] : vector<16x128xf32> to vector<16xf32>
    %2 = vector.shape_cast %1 : vector<16xf32> to vector<16x1xf32>
    %cst_1 = arith.constant 7.812500e-03 : f32
    %3 = vector.broadcast %cst_1 : f32 to vector<16x1xf32>
    %4 = arith.mulf %2, %3 : vector<16x1xf32>
    %5 = vector.broadcast %4 : vector<16x1xf32> to vector<16x128xf32>
    %6 = arith.subf %0, %5 : vector<16x128xf32>
    %7 = arith.mulf %6, %6 : vector<16x128xf32>
    %cst_2 = arith.constant dense<0.000000e+00> : vector<16xf32>
    %8 = vector.multi_reduction <add>, %7, %cst_2 [1] : vector<16x128xf32> to vector<16xf32>
    %9 = vector.shape_cast %8 : vector<16xf32> to vector<16x1xf32>
    %cst_3 = arith.constant 0.00787401571 : f32
    %10 = vector.broadcast %cst_3 : f32 to vector<16x1xf32>
    %11 = arith.mulf %9, %10 : vector<16x1xf32>
    %12 = math.sqrt %11 : vector<16x1xf32>
    %cst_4 = arith.constant 9.99999997E-7 : f32
    %13 = vector.broadcast %cst_4 : f32 to vector<16x1xf32>
    %14 = arith.addf %12, %13 : vector<16x1xf32>
    %15 = tpu.reciprocal %14 : vector<16x1xf32> -> vector<16x1xf32>
    %16 = vector.broadcast %15 : vector<16x1xf32> to vector<16x128xf32>
    %17 = arith.mulf %6, %16 : vector<16x128xf32>
    %c0_5 = arith.constant 0 : index
    %c0_6 = arith.constant 0 : index
    %18 = vector.load %arg2[%c0_5, %c0_6] : memref<1x128xf32, #tpu.memory_space<vmem>>, vector<1x128xf32>
    %19 = vector.broadcast %18 : vector<1x128xf32> to vector<16x128xf32>
    %20 = arith.mulf %17, %19 : vector<16x128xf32>
    %c0_7 = arith.constant 0 : index
    %c0_8 = arith.constant 0 : index
    %21 = vector.load %arg3[%c0_7, %c0_8] : memref<1x128xf32, #tpu.memory_space<vmem>>, vector<1x128xf32>
    %22 = vector.broadcast %21 : vector<1x128xf32> to vector<16x128xf32>
    %23 = arith.addf %20, %22 : vector<16x128xf32>
    %c0_9 = arith.constant 0 : index
    %c0_10 = arith.constant 0 : index
    %24 = vector.load %arg4[%c0_9, %c0_10] : memref<16x128xf32, #tpu.memory_space<vmem>>, vector<16x128xf32>
    tpu.vector_store %arg4[%c0_9, %c0_10], %23 {strides = array<i32>} : memref<16x128xf32, #tpu.memory_space<vmem>>, vector<16x128xf32>,
    return
  }
  func.func @transform_0(%arg0: i32) -> (i32, i32) {
    %c0_i32 = arith.constant 0 : i32
    %c0_i32_0 = arith.constant 0 : i32
    return %arg0, %c0_i32 : i32, i32
  }
  func.func @transform_1(%arg0: i32) -> (i32, i32) {
    %c0_i32 = arith.constant 0 : i32
    %c0_i32_0 = arith.constant 0 : i32
    %c0_i32_1 = arith.constant 0 : i32
    return %c0_i32, %c0_i32_0 : i32, i32
  }
  func.func @transform_2(%arg0: i32) -> (i32, i32) {
    %c0_i32 = arith.constant 0 : i32
    %c0_i32_0 = arith.constant 0 : i32
    %c0_i32_1 = arith.constant 0 : i32
    return %c0_i32, %c0_i32_0 : i32, i32
  }
  func.func @transform_3(%arg0: i32) -> (i32, i32) {
    %c0_i32 = arith.constant 0 : i32
    %c0_i32_0 = arith.constant 0 : i32
    return %arg0, %c0_i32 : i32, i32
  }
}

</mosaic_0001>

<bundles_post_ra>
// kernel: tpu_custom_call.1
= control target key start
LH: loop header
LB: loop body
LE: loop exit
PB: predicated region body
PF: predicated region fallthrough
CT: control target
= control target key end

     0   :  { %8 = vsyncpa [#allocation3], 0  ;;  %s204_s0 = inlined_call_operand.hbm [shape: f32[16,128], index: 0, kind: input, shape index: {}]   ;;  %s205_s1 = inlined_call_operand.vmem [shape: f32[1,128], index: 1, kind: input, shape index: {}]   ;;  %s206_s2 = inlined_call_operand.vmem [shape: f32[1,128], index: 2, kind: input, shape index: {}]   ;;  %s207_s3 = inlined_call_operand.hbm [shape: f32[16,128], index: 3, kind: output, shape index: {}]  }
   0x1   :  { %9 = vsyncpa [#allocation4], 0  ;;  %s162_s12 = smov [#allocation2]  }
   0x2   :  { %s15_s13 = sshll.u32 %s162_s12, 4  ;;  %s16_s13 = int_to_ptr.vmem [resolvable:$true] %s15_s13 }
   0x3   :  { %s126_s14 = scalar_lea.vmem %s16_s13, 256  ;;  %p131_p1 = scmp.lt.s32.totalorder %s16_s13, %s16_s13 }
   0x4   :  { %p127_p0 = scmp.ne.s32.totalorder %s16_s13, %s126_s14  ;;  %p132_p2 = scmp.lt.s32.totalorder %s126_s14, %s126_s14 }
   0x6   :  { %p133_p3 = por %p132_p2, %p131_p1 }
   0x8   :  { %p134_p4 = pnand %p133_p3, %p127_p0 }
   0xa   :  { %137 = shalt.err (!%p134_p4)
}
   0xb   :  { %s163_s15 = smov 128   ;;  %s164_s16 = smov 8  }
   0xc   :  { %21 = dma.hbm_to_vmem [thread:$0]  %s204_s0, 256, %s16_s13, [#allocation3], %s163_s15, %s163_s15, %s164_s16  }
   0xd   :  { %158 = dma.done.wait [#allocation3], 256  }
   0xe   :  { %159 = vsyncadd [#allocation3], 4294967040  ;;  %v29_v0 = vld [vmem:[#allocation2] sm:$0xff]  ;;  %v30_v1 = vld [vmem:[#allocation2 + $0x8] sm:$0xff]  ;;  %s165_s22 = smov [#allocation5]  }
   0xf   :  { %31 = vadd.xlane.f32.xlu0 %v29_v0  ;;  %v104_v27 = vld [vmem:[%s205_s1] ss:$0 sm:$0xff]  ;;  %s92_s23 = sshll.u32 %s165_s22, 4  ;;  %s93_s23 = int_to_ptr.vmem [resolvable:$true] %s92_s23 }
  0x10   :  { %v105_v29 = vld [vmem:[%s206_s2] ss:$0 sm:$0xff]  ;;  %s138_s24 = scalar_lea.vmem %s93_s23, 256  ;;  %p143_p6 = scmp.lt.s32.totalorder %s93_s23, %s93_s23 }
  0x11   :  { %p139_p5 = scmp.ne.s32.totalorder %s93_s23, %s138_s24  ;;  %p144_p7 = scmp.lt.s32.totalorder %s138_s24, %s138_s24 }
  0x13   :  { %33 = vadd.xlane.f32.xlu0 %v30_v1  ;;  %p145_p8 = por %p144_p7, %p143_p6 }
  0x15   :  { %p146_p9 = pnand %p145_p8, %p139_p5 }
  0x98   :  { %v32_v2 = vpop.xlane.xlu0 %31 }
  0x99   :  { %v35_v3 = vmul.f32 0.0078125, %v32_v2 }
  0x9b   :  { %v37_v4 = vsub.f32 %v29_v0, %v35_v3 }
  0x9c   :  { %v34_v5 = vpop.xlane.xlu0 %33 }
  0x9d   :  { %v36_v6 = vmul.f32 0.0078125, %v34_v5  ;;  %v39_v7 = vmul.f32 %v37_v4, %v37_v4 }
  0x9f   :  { %v38_v8 = vsub.f32 %v30_v1, %v36_v6  ;;  %41 = vadd.xlane.f32.xlu1 %v39_v7 }
  0xa1   :  { %v40_v9 = vmul.f32 %v38_v8, %v38_v8 }
  0xa3   :  { %43 = vadd.xlane.f32.xlu1 %v40_v9 }
 0x128   :  { %v42_v10 = vpop.xlane.xlu1 %41 }
 0x129   :  { %v45_v11 = vmul.f32 0.007874016, %v42_v10 }
 0x12b   :  { %110 = vrsqrt.f32 %v45_v11  ;;  %vm49_vm0 = vcmp.eq.f32.partialorder %v45_v11, inf  ;;  %v52_v16 = vand.u32 2147483648, %v45_v11  ;;  %vm51_vm1 = vcmp.eq.f32.partialorder %v45_v11, 0.0 }
 0x12c   :  { %v44_v12 = vpop.xlane.xlu1 %43 }
 0x12d   :  { %v46_v13 = vmul.f32 0.007874016, %v44_v12 }
 0x12f   :  { %112 = vrsqrt.f32 %v46_v13  ;;  %vm56_vm2 = vcmp.eq.f32.partialorder %v46_v13, inf  ;;  %v59_v22 = vand.u32 2147483648, %v46_v13  ;;  %vm58_vm3 = vcmp.eq.f32.partialorder %v46_v13, 0.0 }
 0x138   :  { %v111_v14 = vpop.eup %110 }
 0x139   :  { %v48_v15 = vmul.f32 %v111_v14, %v45_v11 }
 0x13b   :  { %v50_v17 = vsel %vm49_vm0, %v45_v11, %v48_v15 }
 0x13c   :  { %v113_v18 = vpop.eup %112  ;;  %v53_v19 = vsel %vm51_vm1, %v52_v16, %v50_v17 }
 0x13d   :  { %v61_v20 = vadd.f32 1e-06, %v53_v19  ;;  %v55_v21 = vmul.f32 %v113_v18, %v46_v13 }
 0x13f   :  { %114 = vrcp.f32 %v61_v20  ;;  %v57_v23 = vsel %vm56_vm2, %v46_v13, %v55_v21 }
 0x140   :  { %v60_v24 = vsel %vm58_vm3, %v59_v22, %v57_v23 }
 0x141   :  { %v62_v25 = vadd.f32 1e-06, %v60_v24 }
 0x143   :  { %116 = vrcp.f32 %v62_v25 }
 0x14c   :  { %v115_v26 = vpop.eup %114 }
 0x14d   :  { %v65_v28 = vmul.f32 %v115_v26, %v37_v4 }
 0x14f   :  { %v74_v30 = vmul.f32 %v104_v27, %v65_v28 }
 0x150   :  { %v117_v31 = vpop.eup %116 }
 0x151   :  { %v66_v32 = vmul.f32 %v117_v31, %v38_v8  ;;  %v83_v33 = vadd.f32 %v105_v29, %v74_v30 }
 0x153   :  { %v75_v34 = vmul.f32 %v104_v27, %v66_v32  ;;  %85 = vst [vmem:[#allocation5] sm:$0xff] %v83_v33 }
 0x155   :  { %v84_v35 = vadd.f32 %v105_v29, %v75_v34 }
 0x157   :  { %86 = vst [vmem:[#allocation5 + $0x8] sm:$0xff] %v84_v35 }
 0x158   :  { %149 = shalt.err (!%p146_p9)
}
 0x159   :  { %98 = dma.vmem_to_hbm [thread:$0]  %s93_s23, 256, %s207_s3, [#allocation4], %s163_s15, %s163_s15, %s164_s16  }
 0x15a   :  { %160 = dma.done.wait [#allocation4], 256  }
 0x15b   :  { %161 = vsyncadd [#allocation4], 4294967040 }
 0x15c   :  { %102 = vsyncpa [#allocation3], 1 }
 0x15d   :  { %103 = vsyncpa [#allocation4], 1 }

</bundles_post_ra>
